<compile_context>
chip_gen: v6e
topology: v6e:2x2x1
jax: 0.10.0
libtpu: 0.0.40
codegen_flags: <defaults>
</compile_context>

<pallas_src>
import jax
import jax.numpy as jnp
from jax.experimental import pallas as pl
from jax.experimental.pallas import tpu as pltpu
import numpy as np

_IGNORE_INDEX = -100                  # PyTorch F.nll_loss default
_NUM_SPLITS = 2                       # v7x has 2 TensorCores; harmless on v5e/v6e
_VMEM_BUDGET = 20 * 1024 * 1024       # conservative working-set target (< 32 MiB scoped)


def _round_up(x, m):
    return (x + m - 1) // m * m


def _choose_pack_factor(n_rows, n_cls):
    """Rows packed per lane-dense packed row (k*C ~ multiple of 128, k | N)."""
    if n_cls >= 128:
        return 1
    k_cap = max(1, 512 // n_cls)          # keep k*C (and the expander matrix) modest
    best_k = 1
    best_density = n_cls / _round_up(n_cls, 128)
    for k in range(2, min(k_cap, n_rows) + 1):
        if n_rows % k:
            continue                      # never pad pred (that would copy the array)
        density = (k * n_cls) / _round_up(k * n_cls, 128)
        if density >= best_density - 1e-9:    # ties -> larger k (less tgt padding)
            best_k, best_density = k, density
    return best_k


def _make_nll_kernel(tile_g, k, kc, g_total, tiles_per_core):
    def kernel(tgt_ref, e_ref, pred_ref, out_ref):
        i = pl.program_id(1)

        @pl.when(i == 0)
        def _init():
            out_ref[...] = jnp.zeros(out_ref.shape, out_ref.dtype)

        # Logical tile index (unclamped).  The DMA index_map clamps overhang
        # tiles of the core split; here we mask their rows out instead.
        t = pl.program_id(0) * tiles_per_core + i
        grp = jax.lax.broadcasted_iota(jnp.int32, (tile_g, 1), 0) + t * tile_g
        grp_ok = grp < g_total                                        # (tile_g, 1)

        tgt = tgt_ref[...]                                            # (tile_g, k) f32 codes
        lane = jax.lax.broadcasted_iota(jnp.int32, (tile_g, kc), 1)
        if k == 1:
            tgt_lane = tgt.astype(jnp.int32)                          # broadcasts over lanes
        else:
            # Broadcast each row's k target codes across its k*C lanes with a
            # constant 0/1 matrix on the otherwise-idle MXU.
            tgt_lane = jnp.dot(tgt, e_ref[...],
                               preferred_element_type=jnp.float32).astype(jnp.int32)

        match = (lane == tgt_lane) & grp_ok
        picked = jnp.where(match, pred_ref[...], 0)                   # native dtype select
        part_sum = jnp.sum(picked, dtype=jnp.float32)                 # widen on reduce only
        part_cnt = jnp.sum(jnp.where((tgt > -1.5) & grp_ok, 1.0, 0.0))

        # Accumulate the two scalars into elements (0,0)/(0,1) of this core's
        # VMEM-resident output block (full-block RMW; no scalar VMEM loads).
        r = jax.lax.broadcasted_iota(jnp.int32, out_ref.shape, 0)
        c = jax.lax.broadcasted_iota(jnp.int32, out_ref.shape, 1)
        first_row = r == 0
        out_ref[...] += (jnp.where(first_row & (c == 0), part_sum, 0.0)
                         + jnp.where(first_row & (c == 1), part_cnt, 0.0))

    return kernel


def nll_loss_pallas(pred, target, *, ignore_index=_IGNORE_INDEX, block_rows=None):
    """pred: (N, C) log-probs (f32/bf16/...), target: (N,) int -> scalar mean NLL."""
    n_rows, n_cls = pred.shape
    itemsize = jnp.dtype(pred.dtype).itemsize

    # --- lane-dense packing: (N, C) -> (G, k*C); free bit-reshape since k | N ---
    k = _choose_pack_factor(n_rows, n_cls)
    kc = k * n_cls
    g_total = n_rows // k
    pred_packed = pred.reshape(g_total, kc)

    # Per-row target "codes": lane index of the picked element within the packed
    # row, or  -1.0 -> counted but matches nothing (out-of-range target),
    #          -2.0 -> ignore_index row (neither matched nor counted).
    tgt = target.astype(jnp.int32)
    in_range = (tgt >= 0) & (tgt < n_cls)
    lane_id = (jnp.arange(n_rows, dtype=jnp.int32) % k) * n_cls + jnp.clip(tgt, 0, n_cls - 1)
    codes = jnp.where(tgt == ignore_index, -2.0,
                      jnp.where(in_range, lane_id.astype(jnp.float32), -1.0))
    tgt_code = codes.reshape(g_total, k)

    # Constant (k, k*C) 0/1 expander for the in-kernel lane broadcast (resident).
    expand = (jnp.arange(kc, dtype=jnp.int32)[None, :] // n_cls
              == jnp.arange(k, dtype=jnp.int32)[:, None]).astype(jnp.float32)

    # --- tile sizing from padded bytes ---
    lane_pad = _round_up(kc, 128)
    sublane = max(8, 32 // itemsize)          # 8 f32 / 16 bf16 / 32 int8-fp8
    if block_rows is None:
        per_row = (2 * lane_pad * itemsize            # pred tile, double buffered
                   + 2 * _round_up(k, 128) * 4        # target codes, double buffered
                   + lane_pad * (4 + 4 + itemsize + 4))  # in-kernel temporaries
        block_rows = max(sublane, _VMEM_BUDGET // per_row // sublane * sublane)
    tile_g = g_total if block_rows >= g_total else block_rows

    n_tiles = pl.cdiv(g_total, tile_g)
    num_splits = _NUM_SPLITS if n_tiles >= _NUM_SPLITS else 1
    tiles_per_core = pl.cdiv(n_tiles, num_splits)

    def data_map(p, i):
        # Clamp overhang tiles of the core split; the kernel masks them out.
        return (jnp.minimum(p * tiles_per_core + i, n_tiles - 1), 0)

    out = pl.pallas_call(
        _make_nll_kernel(tile_g, k, kc, g_total, tiles_per_core),
        out_shape=jax.ShapeDtypeStruct((num_splits * 8, 128), jnp.float32),
        grid_spec=pltpu.PrefetchScalarGridSpec(
            num_scalar_prefetch=0,
            grid=(num_splits, tiles_per_core),
            in_specs=[
                pl.BlockSpec((tile_g, k), data_map),            # target codes
                pl.BlockSpec((k, kc), lambda p, i: (0, 0)),     # constant expander
                pl.BlockSpec((tile_g, kc), data_map),           # packed pred (native dtype)
            ],
            out_specs=pl.BlockSpec((8, 128), lambda p, i: (p, 0)),  # per-core partials
        ),
        compiler_params=pltpu.CompilerParams(
            dimension_semantics=("parallel", "arbitrary"),
            vmem_limit_bytes=32 * 1024 * 1024,
        ),
    )(tgt_code, expand, pred_packed)

    total = jnp.sum(out[:, 0])          # rows other than each core's row 0 stay zero
    count = jnp.sum(out[:, 1])
    # count == 0 (all rows ignored) yields NaN, matching PyTorch's 0/0 behaviour.
    return -(total / count)


def get_loss_forward(pred, target, trans_feat=None):
    # trans_feat is unused by the reference module's forward (signature parity only).
    return nll_loss_pallas(pred, target)


def _reference_nll(pred, target, ignore_index=_IGNORE_INDEX):
    p32 = pred.astype(jnp.float32)
    valid = target != ignore_index
    idx = jnp.clip(target, 0, pred.shape[1] - 1)[:, None]
    picked = jnp.take_along_axis(p32, idx, axis=1)[:, 0]
    return -(jnp.sum(jnp.where(valid, picked, 0.0)) / jnp.sum(valid.astype(jnp.float32)))


if __name__ == "__main__":
    key = jax.random.PRNGKey(0)
    k1, k2, k3, k4, k5, k6, k7 = jax.random.split(key, 7)

    # Case 1: MNIST-style head (batch=64, classes=10); single packed tile.
    n1, c1 = 64, 10
    pred1 = jax.nn.log_softmax(jax.random.normal(k1, (n1, c1), jnp.float32), axis=-1)
    tgt1 = jax.random.randint(k2, (n1,), 0, c1)
    trans_feat = jax.random.normal(k3, (n1, 16, 16), jnp.float32)   # unused by forward
    got1 = jax.block_until_ready(get_loss_forward(pred1, tgt1, trans_feat))
    ref1 = jax.block_until_ready(_reference_nll(pred1, tgt1))
    assert np.allclose(np.asarray(got1), np.asarray(ref1), rtol=1e-5, atol=1e-6), (got1, ref1)

    # Case 2: gridded path — ragged last tile, clamped overhang tile on the second
    # core split, and an ignore_index=-100 row.
    n2, c2 = 1056, 10
    pred2 = jax.nn.log_softmax(jax.random.normal(k4, (n2, c2), jnp.float32), axis=-1)
    tgt2 = jax.random.randint(k5, (n2,), 0, c2).at[7].set(_IGNORE_INDEX)
    got2 = jax.block_until_ready(nll_loss_pallas(pred2, tgt2, block_rows=8))
    ref2 = jax.block_until_ready(_reference_nll(pred2, tgt2))
    assert np.allclose(np.asarray(got2), np.asarray(ref2), rtol=1e-5, atol=1e-6), (got2, ref2)

    # Case 3: bf16 predictions, two tiles split across the parallel axis.
    n3, c3 = 512, 32
    pred3 = jax.nn.log_softmax(jax.random.normal(k6, (n3, c3), jnp.float32),
                               axis=-1).astype(jnp.bfloat16)
    tgt3 = jax.random.randint(k7, (n3,), 0, c3)
    got3 = jax.block_until_ready(nll_loss_pallas(pred3, tgt3, block_rows=16))
    ref3 = jax.block_until_ready(_reference_nll(pred3, tgt3))
    assert np.allclose(np.asarray(got3), np.asarray(ref3), rtol=1e-4, atol=1e-5), (got3, ref3)

    print("KERNEL_OK")
</pallas_src>

<mosaic_0001>
module attributes {stable_mosaic.version = 11 : i64} {
  func.func @kernel(%arg0: i32, %arg1: i32, %arg2: memref<2x32xf32, #tpu.memory_space<vmem>>, %arg3: memref<32x320xf32, #tpu.memory_space<vmem>>, %arg4: memref<2x320xf32, #tpu.memory_space<vmem>>, %arg5: memref<8x128xf32, #tpu.memory_space<vmem>>) attributes {dimension_semantics = [#tpu.dimension_semantics<parallel>, #tpu.dimension_semantics<arbitrary>], iteration_bounds = array<i64: 1, 1>, scalar_prefetch = 0 : i64, scratch_operands = 0 : i64, tpu.core_type = #tpu.core_type<tc>, window_params = [{transform_indices = @transform_0, window_bounds = array<i64: 2, 32>}, {pipeline_mode = #tpu.pipeline_mode<synchronous>, transform_indices = @transform_1, window_bounds = array<i64: 32, 320>}, {transform_indices = @transform_2, window_bounds = array<i64: 2, 320>}, {transform_indices = @transform_3, window_bounds = array<i64: 8, 128>}]} {
    %c0_i32 = arith.constant 0 : i32
    %0 = arith.cmpi eq, %arg1, %c0_i32 : i32
    %1 = arith.extui %0 : i1 to i32
    %c0_i32_0 = arith.constant 0 : i32
    %2 = arith.cmpi ne, %1, %c0_i32_0 : i32
    scf.if %2 {
      %cst_22 = arith.constant 0.000000e+00 : f32
      %58 = vector.broadcast %cst_22 : f32 to vector<8x128xf32>
      %c0_23 = arith.constant 0 : index
      %c0_24 = arith.constant 0 : index
      %59 = vector.load %arg5[%c0_23, %c0_24] : memref<8x128xf32, #tpu.memory_space<vmem>>, vector<8x128xf32>
      tpu.vector_store %arg5[%c0_23, %c0_24], %58 {strides = array<i32>} : memref<8x128xf32, #tpu.memory_space<vmem>>, vector<8x128xf32>,
    } else {
    }
    %c1_i32 = arith.constant 1 : i32
    %3 = arith.muli %arg0, %c1_i32 : i32
    %4 = arith.addi %3, %arg1 : i32
    %5 = tpu.iota {dimensions = array<i32: 0>} : vector<2x1xi32>
    %c2_i32 = arith.constant 2 : i32
    %6 = arith.muli %4, %c2_i32 : i32
    %7 = vector.broadcast %6 : i32 to vector<2x1xi32>
    %8 = arith.addi %5, %7 : vector<2x1xi32>
    %c2_i32_1 = arith.constant 2 : i32
    %9 = vector.broadcast %c2_i32_1 : i32 to vector<2x1xi32>
    %10 = arith.cmpi slt, %8, %9 : vector<2x1xi32>
    %c0 = arith.constant 0 : index
    %c0_2 = arith.constant 0 : index
    %11 = vector.load %arg2[%c0, %c0_2] : memref<2x32xf32, #tpu.memory_space<vmem>>, vector<2x32xf32>
    %12 = tpu.iota {dimensions = array<i32: 1>} : vector<2x320xi32>
    %c0_3 = arith.constant 0 : index
    %c0_4 = arith.constant 0 : index
    %13 = vector.load %arg3[%c0_3, %c0_4] : memref<32x320xf32, #tpu.memory_space<vmem>>, vector<32x320xf32>
    %cst = arith.constant dense<0.000000e+00> : vector<2x320xf32>
    %14 = tpu.matmul %11, %13, %cst {dimension_numbers = #tpu.dot_dimension_numbers<[1], [0], [0], [1], [0, 0, 1, 1], [], []>} : vector<2x32xf32>, vector<32x320xf32>, vector<2x320xf32> -> vector<2x320xf32>
    %15 = arith.fptosi %14 : vector<2x320xf32> to vector<2x320xi32>
    %16 = arith.cmpi eq, %12, %15 : vector<2x320xi32>
    %17 = vector.broadcast %10 : vector<2x1xi1> to vector<2x320xi1>
    %18 = arith.andi %16, %17 : vector<2x320xi1>
    %c0_5 = arith.constant 0 : index
    %c0_6 = arith.constant 0 : index
    %19 = vector.load %arg4[%c0_5, %c0_6] : memref<2x320xf32, #tpu.memory_space<vmem>>, vector<2x320xf32>
    %c0_i32_7 = arith.constant 0 : i32
    %20 = arith.sitofp %c0_i32_7 : i32 to f32
    %21 = vector.broadcast %20 : f32 to vector<2x320xf32>
    %22 = arith.select %18, %19, %21 : vector<2x320xi1>, vector<2x320xf32>
    %23 = vector.shape_cast %22 : vector<2x320xf32> to vector<1x2x320xf32>
    %cst_8 = arith.constant dense<0.000000e+00> : vector<1xf32>
    %24 = vector.multi_reduction <add>, %23, %cst_8 [1, 2] : vector<1x2x320xf32> to vector<1xf32>
    %25 = vector.shape_cast %24 : vector<1xf32> to vector<1x1x1xf32>
    %26 = vector.extract %25[0, 0, 0] : f32 from vector<1x1x1xf32>
    %cst_9 = arith.constant -1.500000e+00 : f32
    %27 = vector.broadcast %cst_9 : f32 to vector<2x32xf32>
    %28 = arith.cmpf ogt, %11, %27 : vector<2x32xf32>
    %29 = vector.broadcast %10 : vector<2x1xi1> to vector<2x32xi1>
    %30 = arith.andi %28, %29 : vector<2x32xi1>
    %cst_10 = arith.constant 1.000000e+00 : f32
    %cst_11 = arith.constant 0.000000e+00 : f32
    %31 = vector.broadcast %cst_10 : f32 to vector<2x32xf32>
    %32 = vector.broadcast %cst_11 : f32 to vector<2x32xf32>
    %33 = arith.select %30, %31, %32 : vector<2x32xi1>, vector<2x32xf32>
    %34 = vector.shape_cast %33 : vector<2x32xf32> to vector<1x2x32xf32>
    %cst_12 = arith.constant dense<0.000000e+00> : vector<1xf32>
    %35 = vector.multi_reduction <add>, %34, %cst_12 [1, 2] : vector<1x2x32xf32> to vector<1xf32>
    %36 = vector.shape_cast %35 : vector<1xf32> to vector<1x1x1xf32>
    %37 = vector.extract %36[0, 0, 0] : f32 from vector<1x1x1xf32>
    %38 = tpu.iota {dimensions = array<i32: 0>} : vector<8x128xi32>
    %39 = tpu.iota {dimensions = array<i32: 1>} : vector<8x128xi32>
    %c0_i32_13 = arith.constant 0 : i32
    %40 = vector.broadcast %c0_i32_13 : i32 to vector<8x128xi32>
    %41 = arith.cmpi eq, %38, %40 : vector<8x128xi32>
    %c0_14 = arith.constant 0 : index
    %c0_15 = arith.constant 0 : index
    %42 = vector.load %arg5[%c0_14, %c0_15] : memref<8x128xf32, #tpu.memory_space<vmem>>, vector<8x128xf32>
    %c0_i32_16 = arith.constant 0 : i32
    %43 = vector.broadcast %c0_i32_16 : i32 to vector<8x128xi32>
    %44 = arith.cmpi eq, %39, %43 : vector<8x128xi32>
    %45 = arith.andi %41, %44 : vector<8x128xi1>
    %cst_17 = arith.constant 0.000000e+00 : f32
    %46 = vector.broadcast %26 : f32 to vector<8x128xf32>
    %47 = vector.broadcast %cst_17 : f32 to vector<8x128xf32>
    %48 = arith.select %45, %46, %47 : vector<8x128xi1>, vector<8x128xf32>
    %c1_i32_18 = arith.constant 1 : i32
    %49 = vector.broadcast %c1_i32_18 : i32 to vector<8x128xi32>
    %50 = arith.cmpi eq, %39, %49 : vector<8x128xi32>
    %51 = arith.andi %41, %50 : vector<8x128xi1>
    %cst_19 = arith.constant 0.000000e+00 : f32
    %52 = vector.broadcast %37 : f32 to vector<8x128xf32>
    %53 = vector.broadcast %cst_19 : f32 to vector<8x128xf32>
    %54 = arith.select %51, %52, %53 : vector<8x128xi1>, vector<8x128xf32>
    %55 = arith.addf %48, %54 : vector<8x128xf32>
    %56 = arith.addf %42, %55 : vector<8x128xf32>
    %c0_20 = arith.constant 0 : index
    %c0_21 = arith.constant 0 : index
    %57 = vector.load %arg5[%c0_20, %c0_21] : memref<8x128xf32, #tpu.memory_space<vmem>>, vector<8x128xf32>
    tpu.vector_store %arg5[%c0_20, %c0_21], %56 {strides = array<i32>} : memref<8x128xf32, #tpu.memory_space<vmem>>, vector<8x128xf32>,
    return
  }
  func.func @transform_0(%arg0: i32, %arg1: i32) -> (i32, i32) {
    %c1_i32 = arith.constant 1 : i32
    %0 = arith.muli %arg0, %c1_i32 : i32
    %1 = arith.addi %0, %arg1 : i32
    %c0_i32 = arith.constant 0 : i32
    %2 = arith.minsi %1, %c0_i32 : i32
    %c0_i32_0 = arith.constant 0 : i32
    %c0_i32_1 = arith.constant 0 : i32
    return %2, %c0_i32_0 : i32, i32
  }
  func.func @transform_1(%arg0: i32, %arg1: i32) -> (i32, i32) {
    %c0_i32 = arith.constant 0 : i32
    %c0_i32_0 = arith.constant 0 : i32
    %c0_i32_1 = arith.constant 0 : i32
    return %c0_i32, %c0_i32_0 : i32, i32
  }
  func.func @transform_2(%arg0: i32, %arg1: i32) -> (i32, i32) {
    %c1_i32 = arith.constant 1 : i32
    %0 = arith.muli %arg0, %c1_i32 : i32
    %1 = arith.addi %0, %arg1 : i32
    %c0_i32 = arith.constant 0 : i32
    %2 = arith.minsi %1, %c0_i32 : i32
    %c0_i32_0 = arith.constant 0 : i32
    %c0_i32_1 = arith.constant 0 : i32
    return %2, %c0_i32_0 : i32, i32
  }
  func.func @transform_3(%arg0: i32, %arg1: i32) -> (i32, i32) {
    %c0_i32 = arith.constant 0 : i32
    %c0_i32_0 = arith.constant 0 : i32
    return %arg0, %c0_i32 : i32, i32
  }
}

</mosaic_0001>

<bundles_post_ra>
// kernel: tpu_custom_call.1
= control target key start
LH: loop header
LB: loop body
LE: loop exit
PB: predicated region body
PF: predicated region fallthrough
CT: control target
= control target key end

     0   :  { %8 = vsyncpa [#allocation3], 0  ;;  %s533_s0 = inlined_call_operand.hbm [shape: f32[2,32], index: 0, kind: input, shape index: {}]   ;;  %s534_s1 = inlined_call_operand.hbm [shape: f32[32,320], index: 1, kind: input, shape index: {}]   ;;  %s535_s2 = inlined_call_operand.hbm [shape: f32[2,320], index: 2, kind: input, shape index: {}]   ;;  %s536_s3 = inlined_call_operand.hbm [shape: f32[8,128], index: 3, kind: output, shape index: {}]  }
   0x1   :  { %9 = vsyncpa [#allocation6], 0 }
   0x2   :  { %10 = vsyncpa [#allocation4], 0  ;;  %s465_s12 = smov [#allocation5]  }
   0x3   :  { %s31_s13 = sshll.u32 %s465_s12, 4  ;;  %s32_s13 = int_to_ptr.vmem [resolvable:$true] %s31_s13 }
   0x4   :  { %s387_s14 = scalar_lea.vmem %s32_s13, 1536  ;;  %p392_p1 = scmp.lt.s32.totalorder %s32_s13, %s32_s13 }
   0x5   :  { %p388_p0 = scmp.ne.s32.totalorder %s32_s13, %s387_s14  ;;  %p393_p2 = scmp.lt.s32.totalorder %s387_s14, %s387_s14 }
   0x7   :  { %p394_p3 = por %p393_p2, %p392_p1 }
   0x9   :  { %p395_p4 = pnand %p394_p3, %p388_p0 }
   0xb   :  { %398 = shalt.err (!%p395_p4)
}
   0xc   :  { %s466_s15 = smov 384   ;;  %s467_s16 = smov 24  }
   0xd   :  { %37 = dma.hbm_to_vmem [thread:$0]  %s534_s1, 1536, %s32_s13, [#allocation6], %s466_s15, %s466_s15, %s467_s16  }
   0xe   :  { %s468_s19 = smov [#allocation2]   ;;  %s469_s21 = smov [#allocation7]  }
   0xf   :  { %s22_s20 = sshll.u32 %s468_s19, 4  ;;  %s50_s22 = sshll.u32 %s469_s21, 4  ;;  %s23_s20 = int_to_ptr.vmem [resolvable:$true] %s22_s20  ;;  %s51_s22 = int_to_ptr.vmem [resolvable:$true] %s50_s22 }
  0x10   :  { %s407_s23 = scalar_lea.vmem %s23_s20, 32  ;;  %p412_p6 = scmp.lt.s32.totalorder %s23_s20, %s23_s20 }
  0x11   :  { %p408_p5 = scmp.ne.s32.totalorder %s23_s20, %s407_s23  ;;  %p413_p7 = scmp.lt.s32.totalorder %s407_s23, %s407_s23 }
  0x13   :  { %p414_p8 = por %p413_p7, %p412_p6 }
  0x15   :  { %p415_p9 = pnand %p414_p8, %p408_p5 }
  0x17   :  { %418 = shalt.err (!%p415_p9)
}
  0x18   :  { %25 = dma.hbm_to_vmem [thread:$0]  %s533_s0, 32, %s23_s20, [#allocation3]  }
  0x19   :  { %s427_s26 = scalar_lea.vmem %s51_s22, 96  ;;  %p432_p11 = scmp.lt.s32.totalorder %s51_s22, %s51_s22 }
  0x1a   :  { %p428_p10 = scmp.ne.s32.totalorder %s51_s22, %s427_s26  ;;  %p433_p12 = scmp.lt.s32.totalorder %s427_s26, %s427_s26 }
  0x1c   :  { %p434_p13 = por %p433_p12, %p432_p11 }
  0x1e   :  { %p435_p0 = pnand %p434_p13, %p428_p10 }
  0x20   :  { %438 = shalt.err (!%p435_p0)
}
  0x21   :  { %53 = dma.hbm_to_vmem [thread:$0]  %s535_s2, 96, %s51_s22, [#allocation6]  }
  0x22   :  { %459 = dma.done.wait [#allocation3], 32  }
  0x23   :  { %460 = vsyncadd [#allocation3], 4294967264 }
  0x24   :  { %461 = dma.done.wait [#allocation6], 1632  }
  0x25   :  { %462 = vsyncadd [#allocation6], 4294965664  ;;  %v470_v0 = vmov 0.0   ;;  %vm471_vm0 = vmmov 0   ;;  %v96_v1 = vld [vmem:[#allocation5 + $0x50] sm:$0xff]  ;;  %v95_v2 = vld [vmem:[#allocation5 + $0x48] sm:$0xff]  ;;  %v75_v14 = vlaneseq }
  0x26   :  { %348 = vmatprep.subr.mxu1 %v470_v0  ;;  %166 = vmatprep.mubr.f32.mxu0 %v470_v0  ;;  %v93_v3 = vld [vmem:[#allocation5 + $0x38] sm:$0xff]  ;;  %v92_v4 = vld [vmem:[#allocation5 + $0x30] sm:$0xff]  ;;  %v90_v6 = vld [vmem:[#allocation5 + $0x20] sm:$0xff]  ;;  %vm98_vm1 = vcmask 261120   ;;  %v472_v15 = vmov 1983009808  }
  0x27   :  { %356 = vmatprep.mubr.msk.f32.mxu1 %vm471_vm0, %v470_v0  ;;  %126 = vmatprep.subr.mxu0 %v96_v1  ;;  %v97_v5 = vld [vmem:[#allocation5 + $0x58] sm:$0xff]  ;;  %v94_v7 = vld [vmem:[#allocation5 + $0x40] sm:$0xff]  ;;  %v91_v9 = vld [vmem:[#allocation5 + $0x28] sm:$0xff]  ;;  %v258_v16 = vunpack.c.l.s4 %v472_v15  ;;  %v509_v17 = vshrl.u32 %v75_v14, 7  ;;  %v512_v21 = vand.u32 127, %v75_v14  ;;  %vm278_vm6 = vcmask 1041408  }
  0x28   :  { %127 = vmatpush1.msra.mxu0 %v95_v2  ;;  %349 = vmatpush3.msra.mxu1 %v97_v5  ;;  %v89_v8 = vld [vmem:[#allocation5 + $0x18] sm:$0xff]  ;;  %v87_v10 = vld [vmem:[#allocation5 + $0x8] sm:$0xff]  ;;  %v86_v11 = vld [vmem:[#allocation5] sm:$0xff]  ;;  %vm282_vm9 = vcmask 517120   ;;  %vm297_vm13 = vcmask 254976   ;;  %s473_s28 = smov [#allocation8]  }
  0x29   :  { %128 = vmatprep.subr.mxu0 %v93_v3  ;;  %350 = vmatprep.subr.mxu1 %v470_v0  ;;  %v88_v12 = vld [vmem:[#allocation5 + $0x10] sm:$0xff]  ;;  %v81_v13 = vld [vmem:[#allocation2] sm:$0x3]  ;;  %v259_v18 = vunpack.c.0.s8 %v258_v16  ;;  %v254_v20 = vld [vmem:[#allocation7] sm:$0x3f]  ;;  %v85_v26 = vadd.s32 256, %v512_v21 }
  0x2a   :  { %129 = vmatpush1.msra.mxu0 %v92_v4  ;;  %351 = vmatpush3.msra.mxu1 %v94_v7  ;;  %v256_v24 = vcombine.high %v254_v20, %v254_v20  ;;  %vm80_vm2 = vcmp.lt.s32.totalorder %v509_v17, 2  ;;  %v84_v32 = vadd.s32 128, %v512_v21  ;;  %vm294_vm10 = vcmp.gt.f32.partialorder %v81_v13, -1.5  ;;  %s327_s29 = sshll.u32 %s473_s28, 4  ;;  %s328_s29 = int_to_ptr.vmem [resolvable:$true] %s327_s29 }
  0x2b   :  { %130 = vmatprep.subr.mxu0 %v90_v6  ;;  %352 = vmatprep.subr.mxu1 %v470_v0  ;;  %v262_v19 = vsub.s32 %v259_v18, %v509_v17  ;;  %vm295_vm12 = vmand %vm294_vm10, %vm80_vm2  ;;  %vm308_vm14 = vcmp.eq.s32.totalorder %v509_v17, 0  ;;  %vm310_vm15 = vcmp.eq.s32.totalorder %v512_v21, 0  ;;  %vm314_vm0 = vcmp.eq.s32.totalorder %v512_v21, 1  ;;  %s439_s30 = scalar_lea.vmem %s328_s29, 128  ;;  %p444_p2 = scmp.lt.s32.totalorder %s328_s29, %s328_s29 }
  0x2c   :  { %131 = vmatpush1.msra.mxu0 %v89_v8  ;;  %353 = vmatpush3.msra.mxu1 %v91_v9  ;;  %v296_v46 = vsel %vm295_vm12, 1.0, %v470_v0  ;;  %p440_p1 = scmp.ne.s32.totalorder %s328_s29, %s439_s30  ;;  %p445_p3 = scmp.lt.s32.totalorder %s439_s30, %s439_s30 }
  0x2d   :  { %132 = vmatprep.subr.mxu0 %v87_v10  ;;  %354 = vmatprep.subr.mxu1 %v470_v0  ;;  %v263_v28 = vrot.slane %v254_v20, %v262_v19  ;;  %v270_v35 = vrot.slane %v256_v24, %v262_v19  ;;  %v298_v47 = vsel %vm297_vm13, %v296_v46, 0.0 }
  0x2e   :  { %133 = vmatpush1.msra.mxu0 %v86_v11  ;;  %355 = vmatpush3.msra.mxu1 %v88_v12  ;;  %p446_p4 = por %p445_p3, %p444_p2 }
  0x2f   :  { %341 = vmatmul.mubr.msk.f32.vlgmr.msra.gmra.mxu0 %vm98_vm1, %v81_v13  ;;  %357 = vmatmul.mubr.msk.f32.vlgmr.msra.gmra.mxu1 %vm98_vm1, %v81_v13  ;;  %v271_v37 = vcombine.high %v263_v28, %v263_v28  ;;  %vm311_vm1 = vmand %vm308_vm14, %vm310_vm15 }
  0x30   :  { %p447_p5 = pnand %p446_p4, %p440_p1 }
  0xef   :  { %v168_v22 = vpop.f32.mrf.mxu0  ;;  %v239_v23 = vpop.f32.mrf.mxu1 }
  0xf0   :  { %v359_v25 = vtrunc.f32 %v168_v22  ;;  %v363_v27 = vtrunc.f32 %v239_v23 }
  0xf1   :  { %v170_v29 = vpop.f32.mrf.mxu0  ;;  %v358_v30 = vpop.f32.mrf.mxu1 }
  0xf2   :  { %v360_v31 = vcvt.f32.s32 %v359_v25  ;;  %v361_v33 = vtrunc.f32 %v170_v29  ;;  %v364_v34 = vcvt.f32.s32 %v363_v27 }
  0xf4   :  { %vm246_vm3 = vcmp.eq.s32.totalorder %v512_v21, %v360_v31  ;;  %v362_v36 = vcvt.f32.s32 %v361_v33  ;;  %vm248_vm4 = vcmp.eq.s32.totalorder %v85_v26, %v364_v34 }
  0xf5   :  { %vm251_vm5 = vmand %vm246_vm3, %vm80_vm2 }
  0xf6   :  { %vm247_vm7 = vcmp.eq.s32.totalorder %v84_v32, %v362_v36  ;;  %vm253_vm8 = vmand %vm248_vm4, %vm80_vm2  ;;  %v275_v38 = vsel %vm251_vm5, %v263_v28, 0.0 }
  0xf7   :  { %vm252_vm11 = vmand %vm247_vm7, %vm80_vm2  ;;  %v277_v39 = vsel %vm253_vm8, %v270_v35, 0.0  ;;  %v279_v41 = vsel %vm278_vm6, %v275_v38, 0.0 }
  0xf8   :  { %v276_v40 = vsel %vm252_vm11, %v271_v37, 0.0  ;;  %v283_v43 = vsel %vm282_vm9, %v277_v39, 0.0  ;;  %vm315_vm2 = vmand %vm308_vm14, %vm314_vm0 }
  0xf9   :  { %v280_v42 = vsel %vm278_vm6, %v276_v40, 0.0 }
  0xfa   :  { %v281_v44 = vadd.f32 %v280_v42, %v279_v41 }
  0xfc   :  { %v284_v45 = vadd.f32 %v283_v43, %v281_v44 }
  0xfe   :  { %285 = vadd.xlane.f32.xlu0 %v284_v45 }
 0x102   :  { %299 = vadd.xlane.f32.xlu0 %v298_v47 }
 0x187   :  { %v286_v48 = vpop.xlane.xlu0 %285 }
 0x188   :  { %v287_v49 = vrot.slane %v286_v48, 4 }
 0x18a   :  { %v288_v50 = vadd.f32 %v287_v49, %v286_v48 }
 0x18b   :  { %v300_v51 = vpop.xlane.xlu0 %299 }
 0x18c   :  { %v289_v52 = vrot.slane %v288_v50, 2  ;;  %v301_v53 = vrot.slane %v300_v51, 4 }
 0x18e   :  { %v302_v54 = vadd.f32 %v301_v53, %v300_v51  ;;  %v290_v55 = vadd.f32 %v289_v52, %v288_v50 }
 0x190   :  { %v303_v56 = vrot.slane %v302_v54, 2  ;;  %v291_v57 = vrot.slane %v290_v55, 1 }
 0x192   :  { %v304_v58 = vadd.f32 %v303_v56, %v302_v54  ;;  %v292_v59 = vadd.f32 %v291_v57, %v290_v55 }
 0x194   :  { %365 = vpush %v292_v59  ;;  %v305_v60 = vrot.slane %v304_v58, 1 }
 0x196   :  { %v306_v61 = vadd.f32 %v305_v60, %v304_v58 }
 0x198   :  { %367 = vpush %v306_v61 }
 0x1c5   :  { %s366_s0 = spop %365 }
 0x1c6   :  { %v312_v62 = vstv %s366_s0 }
 0x1c7   :  { %v313_v0 = vsel %vm311_vm1, %v312_v62, 0.0 }
 0x1c9   :  { %s368_s2 = spop %367 }
 0x1ca   :  { %v316_v63 = vstv %s368_s2 }
 0x1cb   :  { %v317_v1 = vsel %vm315_vm2, %v316_v63, 0.0 }
 0x1cc   :  { %v318_v2 = vadd.f32 %v317_v1, %v313_v0 }
 0x1ce   :  { %320 = vst [vmem:[#allocation8] sm:$0xff] %v318_v2 }
 0x1cf   :  { %450 = shalt.err (!%p447_p5)
}
 0x1d0   :  { %330 = dma.vmem_to_hbm [thread:$0]  %s328_s29, 128, %s536_s3, [#allocation4]  }
 0x1d1   :  { %463 = dma.done.wait [#allocation4], 128  }
 0x1d2   :  { %464 = vsyncadd [#allocation4], 4294967168 }
 0x1d3   :  { %334 = vsyncpa [#allocation3], 1 }
 0x1d4   :  { %335 = vsyncpa [#allocation6], 1 }
 0x1d5   :  { %336 = vsyncpa [#allocation4], 1 }

</bundles_post_ra>
